<compile_context>
chip_gen: v7x
topology: tpu7x:2x2x1
jax: 0.10.0
libtpu: 0.0.40
codegen_flags: <defaults>
</compile_context>

<pallas_src>
import math
import functools

import jax
import jax.numpy as jnp
from jax.experimental import pallas as pl
from jax.experimental.pallas import tpu as pltpu


# ---------------------------------------------------------------------------
# Kernel: one (batch-tile, q-tile, head) grid step.
# ---------------------------------------------------------------------------
def attention_kernel(q_ref, k_ref, v_ref,
                     wq_ref, wk_ref, wv_ref, wo_ref, bo_ref,
                     out_ref, attnw_ref):
    h = pl.program_id(2)
    n_h = pl.num_programs(2)
    Bt, Tq, Dq = q_ref.shape
    _, K, Dk = k_ref.shape
    Dh = wq_ref.shape[-1]

    @pl.when(h == 0)
    def _():
        out_ref[...] = jnp.zeros_like(out_ref)

    # Per-head projections: batch (and q-tile) folded into the MXU M dimension,
    # bf16 operands, f32 accumulation.  The 1/sqrt(d_hidden) scaling is already
    # folded into wq by the wrapper.
    xq = q_ref[...].reshape(Bt * Tq, Dq).astype(jnp.bfloat16)
    xk = k_ref[...].reshape(Bt * K, Dk).astype(jnp.bfloat16)
    xv = v_ref[...].reshape(Bt * K, Dk).astype(jnp.bfloat16)

    qh = jnp.dot(xq, wq_ref[0], preferred_element_type=jnp.float32)    # (Bt*Tq, Dh)
    kh = jnp.dot(xk, wk_ref[0], preferred_element_type=jnp.float32)    # (Bt*K, Dh)
    vh = jnp.dot(xv, wv_ref[0], preferred_element_type=jnp.float32)    # (Bt*K, Dh)

    qh = qh.reshape(Bt, Tq, Dh).astype(jnp.bfloat16)
    kh = kh.reshape(Bt, K, Dh).astype(jnp.bfloat16)
    vh = vh.reshape(Bt, K, Dh).astype(jnp.bfloat16)

    # Scores: batched contraction over Dh (no explicit transpose of k).
    s = jnp.einsum('bqd,bkd->bqk', qh, kh,
                   preferred_element_type=jnp.float32)                 # (Bt, Tq, K)

    # Softmax over K in f32.  Exact normalization so the returned attention
    # weights sum to 1 along K.
    m = jnp.max(s, axis=-1, keepdims=True)
    e = jnp.exp(s - m)
    p = e * (1.0 / jnp.sum(e, axis=-1, keepdims=True))                 # (Bt, Tq, K)

    # attn_dropout is identity (eval mode).  Single contiguous store of this
    # head's weight block.
    attnw_ref[...] = p.reshape(Bt, 1, Tq, K).astype(attnw_ref.dtype)

    # Context and this head's contribution to the output projection, accumulated
    # straight into the resident out_ref block (no ctx scratch round-trip).
    ctx = jnp.einsum('bqk,bkd->bqd', p.astype(jnp.bfloat16), vh,
                     preferred_element_type=jnp.float32)               # (Bt, Tq, Dh)
    out_h = jnp.dot(ctx.reshape(Bt * Tq, Dh).astype(jnp.bfloat16), wo_ref[0],
                    preferred_element_type=jnp.float32)                # (Bt*Tq, Dq)
    out_ref[...] += out_h.reshape(Bt, Tq, Dq)

    @pl.when(h == n_h - 1)
    def _():
        # to_out bias; out_dropout is identity (eval mode).
        out_ref[...] += bo_ref[...]


# ---------------------------------------------------------------------------
# Wrapper
# ---------------------------------------------------------------------------
def _largest_divisor_leq(n, cap):
    cap = int(max(1, min(n, cap)))
    for d in range(cap, 0, -1):
        if n % d == 0:
            return d
    return 1


def attention_forward(query, key, value, params, *, n_head, d_hidden,
                      b_tile=None, q_tile=None,
                      attn_weights_dtype=jnp.float32):
    B, Q, Dq = query.shape
    _, K, Dk = key.shape

    # --- tiling heuristics ---------------------------------------------------
    if q_tile is None:
        q_tile = Q if Q <= 256 else _largest_divisor_leq(Q, 256)
    assert Q % q_tile == 0, "Q must be divisible by q_tile"

    if b_tile is None:
        # Fill the MXU M dimension (~256 rows fits v6e/v7x's 256-deep MXU and is
        # plenty for v5e's 128-deep MXU).  Always a divisor of B; never force a
        # split -- the batch/q grid axes are "parallel" so megacore sharding on
        # v7x kicks in whenever there is more than one step.
        rows = max(q_tile, K)
        b_tile = _largest_divisor_leq(B, max(1, 256 // rows))
        # Keep the double-buffered per-head attention-weight block well inside a
        # 64 MiB (v7x) VMEM budget.
        itemsize = jnp.dtype(attn_weights_dtype).itemsize
        while b_tile > 1 and 2 * b_tile * q_tile * K * itemsize > (16 << 20):
            b_tile = _largest_divisor_leq(B, b_tile - 1)
    assert B % b_tile == 0, "batch must be divisible by b_tile"
    n_b, n_q = B // b_tile, Q // q_tile

    # --- weight prep (once, outside the kernel) ------------------------------
    # Head-major layout: each grid step DMAs one full (d_in, d_hidden) /
    # (d_hidden, d_query) slab -- blocks equal the full trailing dims, so no
    # (8,128) alignment issues and no in-kernel lane slicing.  Scaling folded
    # into wq; bf16 halves weight DMA; bias stays f32.
    scaling = 1.0 / math.sqrt(d_hidden)
    wq = jnp.transpose((params['wq'] * scaling).reshape(Dq, n_head, d_hidden),
                       (1, 0, 2)).astype(jnp.bfloat16)                 # (H, Dq, Dh)
    wk = jnp.transpose(params['wk'].reshape(Dk, n_head, d_hidden),
                       (1, 0, 2)).astype(jnp.bfloat16)                 # (H, Dk, Dh)
    wv = jnp.transpose(params['wv'].reshape(Dk, n_head, d_hidden),
                       (1, 0, 2)).astype(jnp.bfloat16)                 # (H, Dk, Dh)
    wo = params['wo'].reshape(n_head, d_hidden, Dq).astype(jnp.bfloat16)  # (H, Dh, Dq)
    bo = params['bo'].astype(jnp.float32).reshape(1, Dq)

    out, attn_weights = pl.pallas_call(
        attention_kernel,
        out_shape=(jax.ShapeDtypeStruct((B, Q, Dq), jnp.float32),
                   jax.ShapeDtypeStruct((B, n_head, Q, K), attn_weights_dtype)),
        grid_spec=pltpu.PrefetchScalarGridSpec(
            num_scalar_prefetch=0,
            grid=(n_b, n_q, n_head),
            in_specs=[
                pl.BlockSpec((b_tile, q_tile, Dq), lambda b, q, h: (b, q, 0)),
                pl.BlockSpec((b_tile, K, Dk), lambda b, q, h: (b, 0, 0)),
                pl.BlockSpec((b_tile, K, Dk), lambda b, q, h: (b, 0, 0)),
                pl.BlockSpec((1, Dq, d_hidden), lambda b, q, h: (h, 0, 0)),
                pl.BlockSpec((1, Dk, d_hidden), lambda b, q, h: (h, 0, 0)),
                pl.BlockSpec((1, Dk, d_hidden), lambda b, q, h: (h, 0, 0)),
                pl.BlockSpec((1, d_hidden, Dq), lambda b, q, h: (h, 0, 0)),
                pl.BlockSpec((1, Dq), lambda b, q, h: (0, 0)),
            ],
            out_specs=[
                # Output block stays resident across the (innermost) head axis.
                pl.BlockSpec((b_tile, q_tile, Dq), lambda b, q, h: (b, q, 0)),
                # Attention weights tiled over the head axis (bounds v7x VMEM).
                pl.BlockSpec((b_tile, 1, q_tile, K), lambda b, q, h: (b, h, q, 0)),
            ],
        ),
        compiler_params=pltpu.CompilerParams(
            dimension_semantics=("parallel", "parallel", "arbitrary"),
            vmem_limit_bytes=64 * 1024 * 1024,
        ),
    )(query, key, value, wq, wk, wv, wo, bo)
    return out, attn_weights


# ---------------------------------------------------------------------------
# Deterministic parameter init (mirrors the module's reset_parameters)
# ---------------------------------------------------------------------------
def init_attention_params(key, d_query, d_key, n_head, d_hidden):
    HDh = n_head * d_hidden

    def xavier(k, shape):
        fan_in, fan_out = shape
        bound = math.sqrt(6.0 / (fan_in + fan_out))
        return jax.random.uniform(k, shape, jnp.float32, -bound, bound)

    k1, k2, k3, k4 = jax.random.split(key, 4)
    return dict(
        wq=xavier(k1, (d_query, HDh)),            # to_q (no bias)
        wk=xavier(k2, (d_key, HDh)),              # to_k (no bias)
        wv=xavier(k3, (d_key, HDh)),              # to_v (no bias)
        wo=xavier(k4, (HDh, d_query)),            # to_out weight
        bo=jnp.zeros((1, d_query), jnp.float32),  # to_out bias
    )


# ---------------------------------------------------------------------------
# Pure-JAX reference (PyTorch forward, eval-mode dropout)
# ---------------------------------------------------------------------------
def attention_reference(query, key, value, params, *, n_head, d_hidden):
    B, Q, _ = query.shape
    _, K, _ = key.shape
    scaling = 1.0 / math.sqrt(d_hidden)
    qp = (query @ params['wq']).reshape(B, Q, n_head, d_hidden) * scaling
    kp = (key @ params['wk']).reshape(B, K, n_head, d_hidden)
    vp = (value @ params['wv']).reshape(B, K, n_head, d_hidden)
    scores = jnp.einsum('bqhd,bkhd->bhqk', qp, kp)
    w = jax.nn.softmax(scores, axis=-1)
    ctx = jnp.einsum('bhqk,bkhd->bqhd', w, vp).reshape(B, Q, n_head * d_hidden)
    out = ctx @ params['wo'] + params['bo']
    return out, w


# ---------------------------------------------------------------------------
if __name__ == "__main__":
    B, Q, K = 2, 8, 8
    d_query, d_key = 64, 64
    n_head, d_hidden = 4, 32

    root = jax.random.PRNGKey(0)
    root, kq, kk, kv, kp = jax.random.split(root, 5)
    query = jax.random.normal(kq, (B, Q, d_query), jnp.float32)
    key_in = jax.random.normal(kk, (B, K, d_key), jnp.float32)
    value = jax.random.normal(kv, (B, K, d_key), jnp.float32)

    params = init_attention_params(kp, d_query, d_key, n_head, d_hidden)

    out, attn_w = attention_forward(query, key_in, value, params,
                                    n_head=n_head, d_hidden=d_hidden)
    out = jax.block_until_ready(out)
    attn_w = jax.block_until_ready(attn_w)

    ref_out, ref_w = attention_reference(query, key_in, value, params,
                                         n_head=n_head, d_hidden=d_hidden)

    assert out.shape == (B, Q, d_query)
    assert attn_w.shape == (B, n_head, Q, K)
    # bf16 matmul operands (intentional inference-precision tradeoff) => relaxed
    # tolerance vs. the f32 reference.
    assert jnp.allclose(out, ref_out, rtol=2e-2, atol=2e-2), "attn_output mismatch"
    assert jnp.allclose(attn_w, ref_w, rtol=2e-2, atol=2e-2), "attn_weights mismatch"

    print("KERNEL_OK")
</pallas_src>

<mosaic_0001>
module attributes {stable_mosaic.version = 11 : i64} {
  func.func @attention_kernel(%arg0: i32, %arg1: i32, %arg2: i32, %arg3: memref<2x8x64xf32, #tpu.memory_space<vmem>>, %arg4: memref<2x8x64xf32, #tpu.memory_space<vmem>>, %arg5: memref<2x8x64xf32, #tpu.memory_space<vmem>>, %arg6: memref<1x64x32xbf16, #tpu.memory_space<vmem>>, %arg7: memref<1x64x32xbf16, #tpu.memory_space<vmem>>, %arg8: memref<1x64x32xbf16, #tpu.memory_space<vmem>>, %arg9: memref<1x32x64xbf16, #tpu.memory_space<vmem>>, %arg10: memref<1x64xf32, #tpu.memory_space<vmem>>, %arg11: memref<2x8x64xf32, #tpu.memory_space<vmem>>, %arg12: memref<2x1x8x8xf32, #tpu.memory_space<vmem>>) attributes {dimension_semantics = [#tpu.dimension_semantics<parallel>, #tpu.dimension_semantics<parallel>, #tpu.dimension_semantics<arbitrary>], iteration_bounds = array<i64: 1, 1, 4>, scalar_prefetch = 0 : i64, scratch_operands = 0 : i64, tpu.core_type = #tpu.core_type<tc>, window_params = [{transform_indices = @transform_0, window_bounds = array<i64: 2, 8, 64>}, {transform_indices = @transform_1, window_bounds = array<i64: 2, 8, 64>}, {transform_indices = @transform_2, window_bounds = array<i64: 2, 8, 64>}, {transform_indices = @transform_3, window_bounds = array<i64: 1, 64, 32>}, {transform_indices = @transform_4, window_bounds = array<i64: 1, 64, 32>}, {transform_indices = @transform_5, window_bounds = array<i64: 1, 64, 32>}, {transform_indices = @transform_6, window_bounds = array<i64: 1, 32, 64>}, {pipeline_mode = #tpu.pipeline_mode<synchronous>, transform_indices = @transform_7, window_bounds = array<i64: 1, 64>}, {transform_indices = @transform_8, window_bounds = array<i64: 2, 8, 64>}, {transform_indices = @transform_9, window_bounds = array<i64: 2, 1, 8, 8>}]} {
    %c0_i32 = arith.constant 0 : i32
    %0 = arith.cmpi eq, %arg2, %c0_i32 : i32
    %1 = arith.extui %0 : i1 to i32
    %c0_i32_0 = arith.constant 0 : i32
    %2 = arith.cmpi ne, %1, %c0_i32_0 : i32
    scf.if %2 {
      %cst_40 = arith.constant 0.000000e+00 : f32
      %55 = vector.broadcast %cst_40 : f32 to vector<2x8x64xf32>
      %c0_41 = arith.constant 0 : index
      %c0_42 = arith.constant 0 : index
      %c0_43 = arith.constant 0 : index
      %56 = vector.load %arg11[%c0_41, %c0_42, %c0_43] : memref<2x8x64xf32, #tpu.memory_space<vmem>>, vector<2x8x64xf32>
      tpu.vector_store %arg11[%c0_41, %c0_42, %c0_43], %55 {strides = array<i32>} : memref<2x8x64xf32, #tpu.memory_space<vmem>>, vector<2x8x64xf32>,
    } else {
    }
    %c0 = arith.constant 0 : index
    %c0_1 = arith.constant 0 : index
    %c0_2 = arith.constant 0 : index
    %3 = vector.load %arg3[%c0, %c0_1, %c0_2] : memref<2x8x64xf32, #tpu.memory_space<vmem>>, vector<2x8x64xf32>
    %4 = vector.shape_cast %3 : vector<2x8x64xf32> to vector<16x64xf32>
    %5 = arith.truncf %4 : vector<16x64xf32> to vector<16x64xbf16>
    %c0_3 = arith.constant 0 : index
    %c0_4 = arith.constant 0 : index
    %c0_5 = arith.constant 0 : index
    %6 = vector.load %arg4[%c0_3, %c0_4, %c0_5] : memref<2x8x64xf32, #tpu.memory_space<vmem>>, vector<2x8x64xf32>
    %7 = vector.shape_cast %6 : vector<2x8x64xf32> to vector<16x64xf32>
    %8 = arith.truncf %7 : vector<16x64xf32> to vector<16x64xbf16>
    %c0_6 = arith.constant 0 : index
    %c0_7 = arith.constant 0 : index
    %c0_8 = arith.constant 0 : index
    %9 = vector.load %arg5[%c0_6, %c0_7, %c0_8] : memref<2x8x64xf32, #tpu.memory_space<vmem>>, vector<2x8x64xf32>
    %10 = vector.shape_cast %9 : vector<2x8x64xf32> to vector<16x64xf32>
    %11 = arith.truncf %10 : vector<16x64xf32> to vector<16x64xbf16>
    %c0_9 = arith.constant 0 : index
    %c0_10 = arith.constant 0 : index
    %c0_11 = arith.constant 0 : index
    %12 = vector.load %arg6[%c0_9, %c0_10, %c0_11] : memref<1x64x32xbf16, #tpu.memory_space<vmem>>, vector<1x64x32xbf16>
    %13 = vector.shape_cast %12 : vector<1x64x32xbf16> to vector<64x32xbf16>
    %cst = arith.constant dense<0.000000e+00> : vector<16x32xf32>
    %14 = tpu.matmul %5, %13, %cst {dimension_numbers = #tpu.dot_dimension_numbers<[1], [0], [0], [1], [0, 0, 1, 1], [], []>} : vector<16x64xbf16>, vector<64x32xbf16>, vector<16x32xf32> -> vector<16x32xf32>
    %c0_12 = arith.constant 0 : index
    %c0_13 = arith.constant 0 : index
    %c0_14 = arith.constant 0 : index
    %15 = vector.load %arg7[%c0_12, %c0_13, %c0_14] : memref<1x64x32xbf16, #tpu.memory_space<vmem>>, vector<1x64x32xbf16>
    %16 = vector.shape_cast %15 : vector<1x64x32xbf16> to vector<64x32xbf16>
    %cst_15 = arith.constant dense<0.000000e+00> : vector<16x32xf32>
    %17 = tpu.matmul %8, %16, %cst_15 {dimension_numbers = #tpu.dot_dimension_numbers<[1], [0], [0], [1], [0, 0, 1, 1], [], []>} : vector<16x64xbf16>, vector<64x32xbf16>, vector<16x32xf32> -> vector<16x32xf32>
    %c0_16 = arith.constant 0 : index
    %c0_17 = arith.constant 0 : index
    %c0_18 = arith.constant 0 : index
    %18 = vector.load %arg8[%c0_16, %c0_17, %c0_18] : memref<1x64x32xbf16, #tpu.memory_space<vmem>>, vector<1x64x32xbf16>
    %19 = vector.shape_cast %18 : vector<1x64x32xbf16> to vector<64x32xbf16>
    %cst_19 = arith.constant dense<0.000000e+00> : vector<16x32xf32>
    %20 = tpu.matmul %11, %19, %cst_19 {dimension_numbers = #tpu.dot_dimension_numbers<[1], [0], [0], [1], [0, 0, 1, 1], [], []>} : vector<16x64xbf16>, vector<64x32xbf16>, vector<16x32xf32> -> vector<16x32xf32>
    %21 = vector.shape_cast %14 : vector<16x32xf32> to vector<2x8x32xf32>
    %22 = arith.truncf %21 : vector<2x8x32xf32> to vector<2x8x32xbf16>
    %23 = vector.shape_cast %17 : vector<16x32xf32> to vector<2x8x32xf32>
    %24 = arith.truncf %23 : vector<2x8x32xf32> to vector<2x8x32xbf16>
    %25 = vector.shape_cast %20 : vector<16x32xf32> to vector<2x8x32xf32>
    %26 = arith.truncf %25 : vector<2x8x32xf32> to vector<2x8x32xbf16>
    "tpu.trace_start"() <{level = 10 : i32, message = "bqd,bkd->bqk"}> : () -> ()
    %cst_20 = arith.constant dense<0.000000e+00> : vector<2x8x8xf32>
    %27 = tpu.matmul %22, %24, %cst_20 {dimension_numbers = #tpu.dot_dimension_numbers<[2], [2], [1], [1], [0, 0, 0, 1, 1, 1], [0], [0]>} : vector<2x8x32xbf16>, vector<2x8x32xbf16>, vector<2x8x8xf32> -> vector<2x8x8xf32>
    "tpu.trace_stop"() : () -> ()
    %cst_21 = arith.constant dense<0xFF800000> : vector<2x8xf32>
    %28 = vector.multi_reduction <maximumf>, %27, %cst_21 [2] : vector<2x8x8xf32> to vector<2x8xf32>
    %29 = vector.shape_cast %28 : vector<2x8xf32> to vector<2x8x1xf32>
    %30 = vector.broadcast %29 : vector<2x8x1xf32> to vector<2x8x8xf32>
    %31 = arith.subf %27, %30 : vector<2x8x8xf32>
    %32 = math.exp %31 : vector<2x8x8xf32>
    %cst_22 = arith.constant dense<0.000000e+00> : vector<2x8xf32>
    %33 = vector.multi_reduction <add>, %32, %cst_22 [2] : vector<2x8x8xf32> to vector<2x8xf32>
    %34 = vector.shape_cast %33 : vector<2x8xf32> to vector<2x8x1xf32>
    %cst_23 = arith.constant 1.000000e+00 : f32
    %35 = vector.broadcast %cst_23 : f32 to vector<2x8x1xf32>
    %36 = arith.divf %35, %34 : vector<2x8x1xf32>
    %37 = vector.broadcast %36 : vector<2x8x1xf32> to vector<2x8x8xf32>
    %38 = arith.mulf %32, %37 : vector<2x8x8xf32>
    %39 = vector.shape_cast %38 : vector<2x8x8xf32> to vector<2x1x8x8xf32>
    %c0_24 = arith.constant 0 : index
    %c0_25 = arith.constant 0 : index
    %c0_26 = arith.constant 0 : index
    %c0_27 = arith.constant 0 : index
    %40 = vector.load %arg12[%c0_24, %c0_25, %c0_26, %c0_27] : memref<2x1x8x8xf32, #tpu.memory_space<vmem>>, vector<2x1x8x8xf32>
    tpu.vector_store %arg12[%c0_24, %c0_25, %c0_26, %c0_27], %39 {strides = array<i32>} : memref<2x1x8x8xf32, #tpu.memory_space<vmem>>, vector<2x1x8x8xf32>,
    %41 = arith.truncf %38 : vector<2x8x8xf32> to vector<2x8x8xbf16>
    "tpu.trace_start"() <{level = 10 : i32, message = "bqk,bkd->bqd"}> : () -> ()
    %cst_28 = arith.constant dense<0.000000e+00> : vector<2x8x32xf32>
    %42 = tpu.matmul %41, %26, %cst_28 {dimension_numbers = #tpu.dot_dimension_numbers<[2], [1], [1], [2], [0, 0, 0, 1, 1, 2], [0], [0]>} : vector<2x8x8xbf16>, vector<2x8x32xbf16>, vector<2x8x32xf32> -> vector<2x8x32xf32>
    "tpu.trace_stop"() : () -> ()
    %43 = vector.shape_cast %42 : vector<2x8x32xf32> to vector<16x32xf32>
    %44 = arith.truncf %43 : vector<16x32xf32> to vector<16x32xbf16>
    %c0_29 = arith.constant 0 : index
    %c0_30 = arith.constant 0 : index
    %c0_31 = arith.constant 0 : index
    %45 = vector.load %arg9[%c0_29, %c0_30, %c0_31] : memref<1x32x64xbf16, #tpu.memory_space<vmem>>, vector<1x32x64xbf16>
    %46 = vector.shape_cast %45 : vector<1x32x64xbf16> to vector<32x64xbf16>
    %cst_32 = arith.constant dense<0.000000e+00> : vector<16x64xf32>
    %47 = tpu.matmul %44, %46, %cst_32 {dimension_numbers = #tpu.dot_dimension_numbers<[1], [0], [0], [1], [0, 0, 1, 1], [], []>} : vector<16x32xbf16>, vector<32x64xbf16>, vector<16x64xf32> -> vector<16x64xf32>
    %c0_33 = arith.constant 0 : index
    %c0_34 = arith.constant 0 : index
    %c0_35 = arith.constant 0 : index
    %48 = vector.load %arg11[%c0_33, %c0_34, %c0_35] : memref<2x8x64xf32, #tpu.memory_space<vmem>>, vector<2x8x64xf32>
    %49 = vector.shape_cast %47 : vector<16x64xf32> to vector<2x8x64xf32>
    %50 = arith.addf %48, %49 : vector<2x8x64xf32>
    %c0_36 = arith.constant 0 : index
    %c0_37 = arith.constant 0 : index
    %c0_38 = arith.constant 0 : index
    %51 = vector.load %arg11[%c0_36, %c0_37, %c0_38] : memref<2x8x64xf32, #tpu.memory_space<vmem>>, vector<2x8x64xf32>
    tpu.vector_store %arg11[%c0_36, %c0_37, %c0_38], %50 {strides = array<i32>} : memref<2x8x64xf32, #tpu.memory_space<vmem>>, vector<2x8x64xf32>,
    %c3_i32 = arith.constant 3 : i32
    %52 = arith.cmpi eq, %arg2, %c3_i32 : i32
    %53 = arith.extui %52 : i1 to i32
    %c0_i32_39 = arith.constant 0 : i32
    %54 = arith.cmpi ne, %53, %c0_i32_39 : i32
    scf.if %54 {
      %c0_40 = arith.constant 0 : index
      %c0_41 = arith.constant 0 : index
      %c0_42 = arith.constant 0 : index
      %55 = vector.load %arg11[%c0_40, %c0_41, %c0_42] : memref<2x8x64xf32, #tpu.memory_space<vmem>>, vector<2x8x64xf32>
      %c0_43 = arith.constant 0 : index
      %c0_44 = arith.constant 0 : index
      %56 = vector.load %arg10[%c0_43, %c0_44] : memref<1x64xf32, #tpu.memory_space<vmem>>, vector<1x64xf32>
      %57 = vector.shape_cast %56 : vector<1x64xf32> to vector<1x1x64xf32>
      %58 = vector.broadcast %57 : vector<1x1x64xf32> to vector<2x8x64xf32>
      %59 = arith.addf %55, %58 : vector<2x8x64xf32>
      %c0_45 = arith.constant 0 : index
      %c0_46 = arith.constant 0 : index
      %c0_47 = arith.constant 0 : index
      %60 = vector.load %arg11[%c0_45, %c0_46, %c0_47] : memref<2x8x64xf32, #tpu.memory_space<vmem>>, vector<2x8x64xf32>
      tpu.vector_store %arg11[%c0_45, %c0_46, %c0_47], %59 {strides = array<i32>} : memref<2x8x64xf32, #tpu.memory_space<vmem>>, vector<2x8x64xf32>,
    } else {
    }
    return
  }
  func.func @transform_0(%arg0: i32, %arg1: i32, %arg2: i32) -> (i32, i32, i32) {
    %c0_i32 = arith.constant 0 : i32
    %c0_i32_0 = arith.constant 0 : i32
    return %arg0, %arg1, %c0_i32 : i32, i32, i32
  }
  func.func @transform_1(%arg0: i32, %arg1: i32, %arg2: i32) -> (i32, i32, i32) {
    %c0_i32 = arith.constant 0 : i32
    %c0_i32_0 = arith.constant 0 : i32
    %c0_i32_1 = arith.constant 0 : i32
    return %arg0, %c0_i32, %c0_i32_0 : i32, i32, i32
  }
  func.func @transform_2(%arg0: i32, %arg1: i32, %arg2: i32) -> (i32, i32, i32) {
    %c0_i32 = arith.constant 0 : i32
    %c0_i32_0 = arith.constant 0 : i32
    %c0_i32_1 = arith.constant 0 : i32
    return %arg0, %c0_i32, %c0_i32_0 : i32, i32, i32
  }
  func.func @transform_3(%arg0: i32, %arg1: i32, %arg2: i32) -> (i32, i32, i32) {
    %c0_i32 = arith.constant 0 : i32
    %c0_i32_0 = arith.constant 0 : i32
    %c0_i32_1 = arith.constant 0 : i32
    return %arg2, %c0_i32, %c0_i32_0 : i32, i32, i32
  }
  func.func @transform_4(%arg0: i32, %arg1: i32, %arg2: i32) -> (i32, i32, i32) {
    %c0_i32 = arith.constant 0 : i32
    %c0_i32_0 = arith.constant 0 : i32
    %c0_i32_1 = arith.constant 0 : i32
    return %arg2, %c0_i32, %c0_i32_0 : i32, i32, i32
  }
  func.func @transform_5(%arg0: i32, %arg1: i32, %arg2: i32) -> (i32, i32, i32) {
    %c0_i32 = arith.constant 0 : i32
    %c0_i32_0 = arith.constant 0 : i32
    %c0_i32_1 = arith.constant 0 : i32
    return %arg2, %c0_i32, %c0_i32_0 : i32, i32, i32
  }
  func.func @transform_6(%arg0: i32, %arg1: i32, %arg2: i32) -> (i32, i32, i32) {
    %c0_i32 = arith.constant 0 : i32
    %c0_i32_0 = arith.constant 0 : i32
    %c0_i32_1 = arith.constant 0 : i32
    return %arg2, %c0_i32, %c0_i32_0 : i32, i32, i32
  }
  func.func @transform_7(%arg0: i32, %arg1: i32, %arg2: i32) -> (i32, i32) {
    %c0_i32 = arith.constant 0 : i32
    %c0_i32_0 = arith.constant 0 : i32
    %c0_i32_1 = arith.constant 0 : i32
    return %c0_i32, %c0_i32_0 : i32, i32
  }
  func.func @transform_8(%arg0: i32, %arg1: i32, %arg2: i32) -> (i32, i32, i32) {
    %c0_i32 = arith.constant 0 : i32
    %c0_i32_0 = arith.constant 0 : i32
    return %arg0, %arg1, %c0_i32 : i32, i32, i32
  }
  func.func @transform_9(%arg0: i32, %arg1: i32, %arg2: i32) -> (i32, i32, i32, i32) {
    %c0_i32 = arith.constant 0 : i32
    %c0_i32_0 = arith.constant 0 : i32
    return %arg0, %arg2, %arg1, %c0_i32 : i32, i32, i32, i32
  }
}

</mosaic_0001>

<bundles_post_ra>
// kernel: tpu_custom_call.1
= control target key start
LH: loop header
LB: loop body
LE: loop exit
PB: predicated region body
PF: predicated region fallthrough
CT: control target
= control target key end

     0   :  { %s2665_s0 = inlined_call_operand.hbm [shape: f32[2,8,64], index: 0, kind: input, shape index: {}]   ;;  %s2666_s1 = inlined_call_operand.hbm [shape: f32[2,8,64], index: 1, kind: input, shape index: {}]   ;;  %s2667_s2 = inlined_call_operand.hbm [shape: f32[2,8,64], index: 2, kind: input, shape index: {}]   ;;  %s2668_s3 = inlined_call_operand.hbm [shape: bf16[4,64,32], index: 3, kind: input, shape index: {}]   ;;  %s2669_s4 = inlined_call_operand.hbm [shape: bf16[4,64,32], index: 4, kind: input, shape index: {}]   ;;  %s2670_s5 = inlined_call_operand.hbm [shape: bf16[4,64,32], index: 5, kind: input, shape index: {}]   ;;  %s2671_s6 = inlined_call_operand.hbm [shape: bf16[4,32,64], index: 6, kind: input, shape index: {}]   ;;  %s2672_s7 = inlined_call_operand.hbm [shape: f32[1,64], index: 7, kind: input, shape index: {}]   ;;  %s2673_s8 = inlined_call_operand.hbm [shape: f32[2,8,64], index: 8, kind: output, shape index: {0}]   ;;  %s2674_s9 = inlined_call_operand.hbm [shape: f32[2,4,8,8], index: 9, kind: output, shape index: {1}]  }
   0x1   :  { %2711 = sst [smem:[#allocation36_spill]] %s2665_s0 }
   0x2   :  { %2712 = sst [smem:[#allocation37_spill]] %s2666_s1 }
   0x3   :  { %2713 = sst [smem:[#allocation38_spill]] %s2668_s3 }
   0x4   :  { %2714 = sst [smem:[#allocation39_spill]] %s2670_s5 }
   0x5   :  { %2715 = sst [smem:[#allocation40_spill]] %s2673_s8 }
   0x6   :  { %2716 = sst [smem:[#allocation41_spill]] %s2674_s9 }
   0x7   :  { %15 = vsyncpa [#allocation3], 0 }
   0x8   :  { %16 = vsyncpa [#allocation6], 0 }
   0x9   :  { %17 = vsyncpa [#allocation9], 0 }
   0xa   :  { %19 = vsyncpa [#allocation9 + $0x1], 0 }
   0xb   :  { %20 = vsyncpa [#allocation12], 0 }
   0xc   :  { %22 = vsyncpa [#allocation12 + $0x1], 0 }
   0xd   :  { %23 = vsyncpa [#allocation15], 0 }
   0xe   :  { %24 = vsyncpa [#allocation4], 0 }
   0xf   :  { %25 = vsyncpa [#allocation18], 0 }
  0x10   :  { %27 = vsyncpa [#allocation18 + $0x1], 0  ;;  %s2132_s30 = smov 0   ;;  %s2134_s10 = smov 0  }
  0x11   :  { %s2136_s11 = smov 0   ;;  %s2138_s12 = smov 0  }
  0x12   :  { %s2140_s13 = smov 0   ;;  %s2142_s14 = smov 0  }
  0x13 LB: > { %2717 = sst [smem:[#allocation26_spill]] %s2040_s30  ;;  %s2163_s15 = sadd.s32 4294967295, %s2060_s14   ;;  %s2060_s14 = sphi %s2142_s14, %s33_s14   ;;  %s2056_s13 = sphi %s2140_s13, %s2786_s13   ;;  %s2052_s12 = sphi %s2138_s12, %s2785_s12   ;;  %s2048_s11 = sphi %s2136_s11, %s2784_s11   ;;  %s2044_s10 = sphi %s2134_s10, %s2783_s10   ;;  %s2040_s30 = sphi %s2132_s30, %s2780_s30  }
  0x14   : > { %2718 = sst [smem:[#allocation27_spill]] %s2044_s10  ;;  %s1385_s16 = sadd.s32 4294967294, %s2060_s14  }
  0x15   : > { %2719 = sst [smem:[#allocation28_spill]] %s2052_s12  ;;  %p152_p0 = scmp.ne.s32.totalorder %s2044_s10, %s2040_s30 }
  0x16   : > { %2720 = sst [smem:[#allocation29_spill]] %s2060_s14  ;;  %p2675_p1 = scmp.eq.s32.totalorder %s2163_s15, 0 }
  0x17   : > { %2721 = sst [smem:[#allocation30_spill]] %s2163_s15  ;;  %p313_p3 = scmp.eq.s32.totalorder %s1385_s16, 3 }
  0x18   : > { %p2172_p4 = por %p2675_p1, %p152_p0  ;;  %p1386_p5 = scmp.ge.s32.totalorder %s2060_s14, 1 }
  0x19   : > { %p2177_p6 = por %p313_p3, %p152_p0  ;;  %p320_p7 = scmp.lt.s32.totalorder %s2060_s14, 5 }
  0x1a   : > { %s2722_s17 = scalar_select %p2172_p4, 1, 0 }
  0x1b   : > { %s2724_s18 = scalar_select %p2177_p6, 1, 0 }
  0x1c   : > { %2723 = sst [smem:[#allocation31_spill]] %s2722_s17  ;;  %p2182_p8 = pnand %p1386_p5, %p320_p7 }
  0x1d   : > { %2725 = sst [smem:[#allocation32_spill]] %s2724_s18  ;;  %s2062_s20 = smov [#allocation5]  }
  0x1e   : > { %s2726_s19 = scalar_select %p2182_p8, 1, 0 }
  0x1f   : > { %p1573_p9 = pneg %p2182_p8  ;;  %s352_s21 = sshll.u32 %s2062_s20, 4  ;;  %s353_s21 = int_to_ptr.vmem [resolvable:$true] %s352_s21 }
  0x20   : > { %s45_s23 = sadd.s32 1, %s2056_s13  ;;  %s2728_s1 = sld [smem:[#allocation37_spill]] }
  0x21   : > { %p2190_p10 = pnand %p1573_p9, %p2675_p1 }
  0x23   : > { %s2727_s22 = scalar_select %p2190_p10, 1, 0 }
  0x24   : > { %p2203_p12 = pneg %p2190_p10 }
  0x26   : > { %s1700_s26 = scalar_lea.hbm %s2728_s1, 256 }
  0x27   : > { %p1701_p11 = scmp.ne.s32.totalorder %s2728_s1, %s1700_s26  ;;  %p1707_p3 = scmp.lt.u32.totalorder %s1700_s26, %s2728_s1 }
  0x28   : > { %s2729_s29 = scalar_select %p2203_p12, 1, 0 }
  0x29   : > { %p1703_p13 = pnand %p2203_p12, %p1701_p11 }
  0x2b   : > { %p1704_p0 = pneg %p1703_p13 }
  0x2d   : > { %p1709_p5 = pnand %p1707_p3, %p1704_p0 }
  0x2f   : > { %1712 = shalt.err (!%p1709_p5)
}
  0x30   : > { %s1713_s24 = scalar_lea.vmem %s353_s21, 256  ;;  %p1721_p2 = scmp.lt.s32.totalorder %s353_s21, %s353_s21 }
  0x31   : > { %p1714_p7 = scmp.ne.s32.totalorder %s353_s21, %s1713_s24  ;;  %p1722_p6 = scmp.lt.s32.totalorder %s1713_s24, %s1713_s24 }
  0x33   : > { %p1716_p9 = pnand %p1714_p7, %p2203_p12  ;;  %p1723_p4 = por %p1722_p6, %p1721_p2 }
  0x35   : > { %p1717_p1 = pneg %p1716_p9 }
  0x37   : > { %p1724_p8 = pnand %p1723_p4, %p1717_p1 }
  0x39   : > { %1727 = shalt.err (!%p1724_p8)
}
  0x3a   : > { %s2678_s25 = smov 128   ;;  %s2680_s26 = smov 8  }
  0x3b   : > { %1579 = dma.hbm_to_vmem [thread:$0]  (!%p2190_p10), %s2728_s1, 256, %s353_s21, [#allocation6], %s2678_s25, %s2678_s25, %s2680_s26  }
  0x3c   : > { %p46_p1 = scmp.ge.s32.totalorder %s45_s23, 4  ;;  %s139_s16 = sadd.s32 1, %s2048_s11 }
  0x3d   : > { %p146_p2 = scmp.ne.s32.totalorder %s2048_s11, %s2044_s10  ;;  %p147_p4 = scmp.eq.s32.totalorder %s2060_s14, 0 }
  0x3e   : > { %s2788_s23 = smov (%p46_p1, %s45_s23), 0  ;;  %p2732_p8 = scmp.eq.s32.totalorder %s2163_s15, 3 }
  0x3f   : > { %2730 = sst [smem:[#allocation33_spill]] %s2788_s23  ;;  %p2228_p6 = por %p147_p4, %p146_p2 }
  0x40   : > { %p2234_p11 = por %p2732_p8, %p146_p2  ;;  %s136_s27 = ssub.s32 %s2056_s13, %s2788_s23 }
  0x41   : > { %p1607_p13 = scmp.lt.s32.totalorder %s2060_s14, 4  ;;  %p137_p0 = scmp.eq.s32.totalorder %s136_s27, 0 }
  0x42   : > { %s2733_s24 = scalar_select %p2234_p11, 1, 0 }
  0x43   : > { %s2685_s28 = sand.u32 1, %s2048_s11   ;;  %s2251_s1 = sshll.u32 %s2056_s13, 9 }
  0x44   : > { %2734 = sst [smem:[#allocation34_spill]] %s2733_s24  ;;  %s2248_s26 = sshll.u32 %s2685_s28, 5 }
  0x45   : > { %s2244_s25 = scalar_select %p137_p0, %s2048_s11, %s139_s16  }
  0x46   : > { %s2736_s3 = sld [smem:[#allocation38_spill]]  ;;  %s397_s27 = scalar_lea.vmem [#allocation8], %s2248_s26 }
  0x47   : > { %2735 = sst [smem:[#allocation35_spill]] %s2244_s25  ;;  %s404_s21 = sshll.u32 %s397_s27, 4  ;;  %s2266_s21 = int_to_ptr.vmem [resolvable:$true] %s404_s21 }
  0x48   : > { %p2262_p3 = pnand %p1607_p13, %p2228_p6  ;;  %s2738_s28 = sand.u32 1, %s2060_s14  }
  0x49   : > { %s2270_s23 = scalar_lea.sflag [#allocation9], %s2738_s28 }
  0x4a   : > { %s2737_s16 = scalar_select %p2262_p3, 1, 0 }
  0x4b   : > { %p2276_p7 = pneg %p2262_p3 }
  0x4c   : > { %s2257_s9 = scalar_lea.hbm %s2736_s3, %s2251_s1  ;;  %s1733_s25 = scalar_lea.hbm %s2736_s3, 2048 }
  0x4d   : > { %s1728_s30 = scalar_lea.hbm %s2257_s9, 512  ;;  %p1734_p2 = scmp.lt.u32.totalorder %s2257_s9, %s2736_s3 }
  0x4e   : > { %p1729_p5 = scmp.ne.s32.totalorder %s2257_s9, %s1728_s30  ;;  %p1735_p4 = scmp.lt.u32.totalorder %s1733_s25, %s1728_s30 }
  0x4f   : > { %s2739_s18 = scalar_select %p2276_p7, 1, 0 }
  0x50   : > { %p1731_p9 = pnand %p2276_p7, %p1729_p5  ;;  %p1736_p6 = por %p1735_p4, %p1734_p2 }
  0x51   : > { %p1737_p8 = scmp.lt.u32.totalorder %s1728_s30, %s2257_s9 }
  0x52   : > { %p1732_p1 = pneg %p1731_p9 }
  0x53   : > { %p1738_p13 = por %p1737_p8, %p1736_p6 }
  0x55   : > { %p1739_p0 = pnand %p1738_p13, %p1732_p1 }
  0x57   : > { %1742 = shalt.err (!%p1739_p0)
}
  0x58   : > { %s1743_s28 = scalar_lea.vmem %s2266_s21, 512  ;;  %s2065_s20 = smov [#allocation8]  }
  0x59   : > { %p1744_p5 = scmp.ne.s32.totalorder %s2266_s21, %s1743_s28  ;;  %s1748_s27 = sshll.u32 %s2065_s20, 4  ;;  %s1749_s27 = int_to_ptr.vmem [resolvable:$false] %s1748_s27 }
  0x5a   : > { %s1750_s8 = scalar_lea.vmem %s1749_s27, 1024  ;;  %p1751_p10 = scmp.lt.s32.totalorder %s2266_s21, %s1749_s27 }
  0x5b   : > { %p1746_p9 = pnand %p1744_p5, %p2276_p7  ;;  %p1752_p12 = scmp.lt.s32.totalorder %s1750_s8, %s1743_s28 }
  0x5d   : > { %p1747_p11 = pneg %p1746_p9  ;;  %p1753_p2 = por %p1752_p12, %p1751_p10 }
  0x5f   : > { %p1754_p4 = pnand %p1753_p2, %p1747_p11 }
  0x61   : > { %1757 = shalt.err (!%p1754_p4)
}
  0x62   : > { %s2697_s25 = smov 64   ;;  %s2709_s24 = smov 4  }
  0x63   : > { %1589 = dma.hbm_to_vmem [thread:$0]  (!%p2262_p3), %s2257_s9, 512, %s2266_s21, %s2270_s23, %s2697_s25, %s2697_s25, %s2709_s24  }
  0x64   : > { %s2740_s5 = sld [smem:[#allocation39_spill]]  ;;  %s439_s27 = scalar_lea.vmem [#allocation11], %s2248_s26 }
  0x65   : > { %s446_s8 = sshll.u32 %s439_s27, 4  ;;  %s2741_s3 = sand.u32 1, %s2060_s14   ;;  %s2310_s8 = int_to_ptr.vmem [resolvable:$true] %s446_s8 }
  0x66   : > { %s2314_s12 = scalar_lea.sflag [#allocation12], %s2741_s3 }
  0x6a   : > { %s2307_s20 = scalar_lea.hbm %s2740_s5, %s2251_s1  ;;  %s1763_s30 = scalar_lea.hbm %s2740_s5, 2048 }
  0x6b   : > { %s1758_s17 = scalar_lea.hbm %s2307_s20, 512  ;;  %p1764_p1 = scmp.lt.u32.totalorder %s2307_s20, %s2740_s5 }
  0x6c   : > { %p1759_p10 = scmp.ne.s32.totalorder %s2307_s20, %s1758_s17  ;;  %p1765_p6 = scmp.lt.u32.totalorder %s1763_s30, %s1758_s17 }
  0x6d   : > { %p1767_p13 = scmp.lt.u32.totalorder %s1758_s17, %s2307_s20 }
  0x6e   : > { %p1761_p12 = pnand %p1759_p10, %p2276_p7  ;;  %p1766_p8 = por %p1765_p6, %p1764_p1 }
  0x70   : > { %p1762_p11 = pneg %p1761_p12  ;;  %p1768_p0 = por %p1767_p13, %p1766_p8 }
  0x72   : > { %p1769_p5 = pnand %p1768_p0, %p1762_p11 }
  0x74   : > { %1772 = shalt.err (!%p1769_p5)
}
  0x75   : > { %s1773_s3 = scalar_lea.vmem %s2310_s8, 512  ;;  %s2068_s27 = smov [#allocation11]  }
  0x76   : > { %p1774_p9 = scmp.ne.s32.totalorder %s2310_s8, %s1773_s3  ;;  %s1778_s9 = sshll.u32 %s2068_s27, 4  ;;  %s1779_s9 = int_to_ptr.vmem [resolvable:$false] %s1778_s9 }
  0x77   : > { %s1780_s25 = scalar_lea.vmem %s1779_s9, 1024  ;;  %p1781_p10 = scmp.lt.s32.totalorder %s2310_s8, %s1779_s9 }
  0x78   : > { %p1776_p2 = pnand %p1774_p9, %p2276_p7  ;;  %p1782_p12 = scmp.lt.s32.totalorder %s1780_s25, %s1773_s3 }
  0x7a   : > { %p1777_p4 = pneg %p1776_p2  ;;  %p1783_p1 = por %p1782_p12, %p1781_p10 }
  0x7c   : > { %p1784_p6 = pnand %p1783_p1, %p1777_p4 }
  0x7e   : > { %1787 = shalt.err (!%p1784_p6)
}
  0x7f   : > { %s2742_s17 = smov 64   ;;  %s2069_s21 = smov [#allocation2]  }
  0x80   : > { %1595 = dma.hbm_to_vmem [thread:$0]  (!%p2262_p3), %s2307_s20, 512, %s2310_s8, %s2314_s12, %s2742_s17, %s2742_s17, %s2709_s24  }
  0x81   : > { %s336_s30 = sshll.u32 %s2069_s21, 4  ;;  %s2070_s28 = smov [#allocation7]   ;;  %s337_s30 = int_to_ptr.vmem [resolvable:$true] %s336_s30 }
  0x82   : > { %s368_s27 = sshll.u32 %s2070_s28, 4  ;;  %s2743_s0 = sld [smem:[#allocation36_spill]]  ;;  %s369_s27 = int_to_ptr.vmem [resolvable:$true] %s368_s27 }
  0x83   : > { %p2744_p8 = scmp.ne.s32.totalorder %s2729_s29, 0 }
  0x88   : > { %s1788_s25 = scalar_lea.hbm %s2743_s0, 256 }
  0x89   : > { %p1789_p11 = scmp.ne.s32.totalorder %s2743_s0, %s1788_s25  ;;  %p1795_p5 = scmp.lt.u32.totalorder %s1788_s25, %s2743_s0 }
  0x8b   : > { %p1791_p13 = pnand %p1789_p11, %p2744_p8 }
  0x8d   : > { %p1792_p0 = pneg %p1791_p13 }
  0x8f   : > { %p1797_p9 = pnand %p1795_p5, %p1792_p0 }
  0x91   : > { %1800 = shalt.err (!%p1797_p9)
}
  0x92   : > { %s1801_s20 = scalar_lea.vmem %s337_s30, 256  ;;  %p1809_p12 = scmp.lt.s32.totalorder %s337_s30, %s337_s30 }
  0x93   : > { %p1802_p2 = scmp.ne.s32.totalorder %s337_s30, %s1801_s20  ;;  %p1810_p1 = scmp.lt.s32.totalorder %s1801_s20, %s1801_s20 }
  0x95   : > { %p1804_p4 = pnand %p1802_p2, %p2744_p8  ;;  %p1811_p6 = por %p1810_p1, %p1809_p12 }
  0x97   : > { %p1805_p10 = pneg %p1804_p4 }
  0x99   : > { %p1812_p3 = pnand %p1811_p6, %p1805_p10 }
  0x9b   : > { %1815 = shalt.err (!%p1812_p3)
}
  0x9c   : > { %p2745_p11 = scmp.ne.s32.totalorder %s2727_s22, 0  ;;  %s2746_s5 = smov 8  }
  0x9d   : > { %s2747_s14 = smov 128   ;;  %s1816_s28 = scalar_lea.hbm %s2667_s2, 256 }
  0x9e   : > { %1576 = dma.hbm_to_vmem [thread:$0]  (!%p2745_p11), %s2743_s0, 256, %s337_s30, [#allocation3], %s2747_s14, %s2747_s14, %s2746_s5  }
  0x9f   : > { %p1817_p13 = scmp.ne.s32.totalorder %s2667_s2, %s1816_s28  ;;  %p1823_p5 = scmp.lt.u32.totalorder %s1816_s28, %s2667_s2 }
  0xa1   : > { %p1819_p3 = pnand %p1817_p13, %p2744_p8 }
  0xa3   : > { %p1820_p0 = pneg %p1819_p3 }
  0xa5   : > { %p1825_p9 = pnand %p1823_p5, %p1820_p0 }
  0xa7   : > { %1828 = shalt.err (!%p1825_p9)
}
  0xa8   : > { %s1829_s10 = scalar_lea.vmem %s369_s27, 256  ;;  %p1837_p12 = scmp.lt.s32.totalorder %s369_s27, %s369_s27 }
  0xa9   : > { %p1830_p2 = scmp.ne.s32.totalorder %s369_s27, %s1829_s10  ;;  %p1838_p1 = scmp.lt.s32.totalorder %s1829_s10, %s1829_s10 }
  0xab   : > { %p1832_p4 = pnand %p1830_p2, %p2744_p8  ;;  %p1839_p6 = por %p1838_p1, %p1837_p12 }
  0xad   : > { %p1833_p10 = pneg %p1832_p4 }
  0xaf   : > { %p1840_p7 = pnand %p1839_p6, %p1833_p10 }
  0xb1   : > { %1843 = shalt.err (!%p1840_p7)
}
  0xb2   : > { %1582 = dma.hbm_to_vmem [thread:$0]  (!%p2745_p11), %s2667_s2, 256, %s369_s27, [#allocation6], %s2747_s14, %s2747_s14, %s2746_s5  }
  0xb3   : > { %s2071_s8 = smov [#allocation14]   ;;  %s2387_s3 = scalar_lea.hbm %s2669_s4, %s2251_s1 }
  0xb4   : > { %s382_s21 = sshll.u32 %s2071_s8, 4  ;;  %s1844_s10 = scalar_lea.hbm %s2672_s7, 16  ;;  %s383_s21 = int_to_ptr.vmem [resolvable:$true] %s382_s21 }
  0xb5   : > { %p1845_p7 = scmp.ne.s32.totalorder %s2672_s7, %s1844_s10  ;;  %p1851_p0 = scmp.lt.u32.totalorder %s1844_s10, %s2672_s7 }
  0xb7   : > { %p1847_p13 = pnand %p1845_p7, %p2744_p8 }
  0xb9   : > { %p1848_p3 = pneg %p1847_p13 }
  0xbb   : > { %p1853_p5 = pnand %p1851_p0, %p1848_p3 }
  0xbd   : > { %1856 = shalt.err (!%p1853_p5)
}
  0xbe   : > { %s1857_s14 = scalar_lea.vmem %s383_s21, 16  ;;  %s1864_s1 = scalar_lea.vmem %s383_s21, 32 }
  0xbf   : > { %p1858_p9 = scmp.ne.s32.totalorder %s383_s21, %s1857_s14  ;;  %p1865_p10 = scmp.lt.s32.totalorder %s383_s21, %s383_s21 }
  0xc0   : > { %p1866_p12 = scmp.lt.s32.totalorder %s1864_s1, %s1857_s14 }
  0xc1   : > { %p1860_p2 = pnand %p1858_p9, %p2744_p8 }
  0xc2   : > { %p1867_p1 = por %p1866_p12, %p1865_p10 }
  0xc3   : > { %p1861_p4 = pneg %p1860_p2 }
  0xc5   : > { %p1868_p6 = pnand %p1867_p1, %p1861_p4 }
  0xc7   : > { %1871 = shalt.err (!%p1868_p6)
}
  0xc8   : > { %1585 = dma.hbm_to_vmem [thread:$0]  (!%p2745_p11), %s2672_s7, 16, %s383_s21, [#allocation15]  }
  0xc9   : > { %s418_s29 = scalar_lea.vmem [#allocation10], %s2248_s26  ;;  %s2748_s15 = sand.u32 1, %s2048_s11  }
  0xca   : > { %s425_s30 = sshll.u32 %s418_s29, 4  ;;  %s2410_s8 = sshll.u32 %s2748_s15, 4  ;;  %s2412_s30 = int_to_ptr.vmem [resolvable:$true] %s425_s30 }
  0xcb   : > { %s1872_s28 = scalar_lea.hbm %s2387_s3, 512  ;;  %p2749_p7 = scmp.ne.s32.totalorder %s2739_s18, 0 }
  0xcc   : > { %p1873_p8 = scmp.ne.s32.totalorder %s2387_s3, %s1872_s28  ;;  %s1877_s25 = scalar_lea.hbm %s2669_s4, 2048 }
  0xcd   : > { %p1878_p11 = scmp.lt.u32.totalorder %s2387_s3, %s2669_s4  ;;  %p1879_p0 = scmp.lt.u32.totalorder %s1877_s25, %s1872_s28 }
  0xce   : > { %p1875_p13 = pnand %p1873_p8, %p2749_p7  ;;  %p1881_p9 = scmp.lt.u32.totalorder %s1872_s28, %s2387_s3 }
  0xcf   : > { %p1880_p5 = por %p1879_p0, %p1878_p11 }
  0xd0   : > { %p1876_p3 = pneg %p1875_p13 }
  0xd1   : > { %p1882_p2 = por %p1881_p9, %p1880_p5 }
  0xd3   : > { %p1883_p4 = pnand %p1882_p2, %p1876_p3 }
  0xd5   : > { %1886 = shalt.err (!%p1883_p4)
}
  0xd6   : > { %s1887_s26 = scalar_lea.vmem %s2412_s30, 512  ;;  %s2072_s21 = smov [#allocation10]  }
  0xd7   : > { %p1888_p10 = scmp.ne.s32.totalorder %s2412_s30, %s1887_s26  ;;  %s1892_s27 = sshll.u32 %s2072_s21, 4  ;;  %s1893_s27 = int_to_ptr.vmem [resolvable:$false] %s1892_s27 }
  0xd8   : > { %s1894_s5 = scalar_lea.vmem %s1893_s27, 1024  ;;  %p1895_p6 = scmp.lt.s32.totalorder %s2412_s30, %s1893_s27 }
  0xd9   : > { %p1890_p12 = pnand %p1888_p10, %p2749_p7  ;;  %p1896_p8 = scmp.lt.s32.totalorder %s1894_s5, %s1887_s26 }
  0xdb   : > { %p1891_p1 = pneg %p1890_p12  ;;  %p1897_p13 = por %p1896_p8, %p1895_p6 }
  0xdd   : > { %p1898_p11 = pnand %p1897_p13, %p1891_p1 }
  0xdf   : > { %1901 = shalt.err (!%p1898_p11)
}
  0xe0   : > { %p2750_p3 = scmp.ne.s32.totalorder %s2737_s16, 0  ;;  %s2751_s14 = smov 4  }
  0xe1   : > { %s1448_s1 = sshll.u32 %s2056_s13, 8  ;;  %s460_s0 = scalar_lea.vmem [#allocation13], %s2410_s8 }
  0xe2   : > { %1592 = dma.hbm_to_vmem [thread:$0]  (!%p2750_p3), %s2387_s3, 512, %s2412_s30, %s2270_s23, %s2742_s17, %s2742_s17, %s2751_s14  }
  0xe3   : > { %s467_s24 = sshll.u32 %s460_s0, 4  ;;  %s2444_s28 = scalar_lea.hbm %s2671_s6, %s1448_s1  ;;  %s2446_s24 = int_to_ptr.vmem [resolvable:$true] %s467_s24 }
  0xe4   : > { %s1902_s22 = scalar_lea.hbm %s2444_s28, 256  ;;  %s1907_s30 = scalar_lea.hbm %s2671_s6, 1024 }
  0xe5   : > { %p1903_p0 = scmp.ne.s32.totalorder %s2444_s28, %s1902_s22  ;;  %p1908_p2 = scmp.lt.u32.totalorder %s2444_s28, %s2671_s6 }
  0xe6   : > { %p1909_p4 = scmp.lt.u32.totalorder %s1907_s30, %s1902_s22  ;;  %p1911_p12 = scmp.lt.u32.totalorder %s1902_s22, %s2444_s28 }
  0xe7   : > { %p1905_p5 = pnand %p1903_p0, %p2749_p7 }
  0xe8   : > { %p1910_p10 = por %p1909_p4, %p1908_p2 }
  0xe9   : > { %p1906_p9 = pneg %p1905_p5 }
  0xea   : > { %p1912_p1 = por %p1911_p12, %p1910_p10 }
  0xec   : > { %p1913_p6 = pnand %p1912_p1, %p1906_p9 }
  0xee   : > { %1916 = shalt.err (!%p1913_p6)
}
  0xef   : > { %s1917_s25 = scalar_lea.vmem %s2446_s24, 256  ;;  %s2073_s20 = smov [#allocation13]  }
  0xf0   : > { %p1918_p8 = scmp.ne.s32.totalorder %s2446_s24, %s1917_s25  ;;  %s1922_s10 = sshll.u32 %s2073_s20, 4  ;;  %s1923_s10 = int_to_ptr.vmem [resolvable:$false] %s1922_s10 }
  0xf1   : > { %s1924_s26 = scalar_lea.vmem %s1923_s10, 512  ;;  %p1925_p0 = scmp.lt.s32.totalorder %s2446_s24, %s1923_s10 }
  0xf2   : > { %p1920_p13 = pnand %p1918_p8, %p2749_p7  ;;  %p1926_p5 = scmp.lt.s32.totalorder %s1924_s26, %s1917_s25 }
  0xf4   : > { %p1921_p11 = pneg %p1920_p13  ;;  %p1927_p2 = por %p1926_p5, %p1925_p0 }
  0xf6   : > { %p1928_p4 = pnand %p1927_p2, %p1921_p11 }
  0xf8   : > { %1931 = shalt.err (!%p1928_p4)
}
  0xf9   : > { %1598 = dma.hbm_to_vmem [thread:$0]  (!%p2750_p3), %s2444_s28, 256, %s2446_s24, %s2314_s12, %s2742_s17, %s2742_s17, %s2751_s14  }
  0xfa   : > { %p2752_p7 = scmp.ne.s32.totalorder %s2726_s19, 0 }
  0xfb   : > { %s2753_s18 = sld [smem:[#allocation30_spill]] (!%p2752_p7) }
  0xfc   : > { %479 = sbr.rel (%p2752_p7) target bundleno = 1574 (0x626), region = 52 }
 0x101   : > { %p2754_p9 = scmp.eq.s32.totalorder (!%p2752_p7), %s2753_s18, 0 }
 0x103   : > { %2011 = dma.done.wait (%p2754_p9), [#allocation3], 256   ;;  %p2755_p10 = pmov %p2754_p9 }
 0x104   : > { %p2756_p12 = pmov %p2754_p9 }
 0x105   : > { %2013 = vsyncadd (%p2755_p10), [#allocation3], 4294967040 }
 0x106   : > { %2015 = dma.done.wait (%p2756_p12), [#allocation6], 512   ;;  %p2757_p1 = pmov %p2754_p9 }
 0x107   : > { %s2758_s16 = sld [smem:[#allocation27_spill]]  ;;  %s2759_s21 = sld [smem:[#allocation31_spill]] }
 0x108   : > { %2017 = vsyncadd (%p2757_p1), [#allocation6], 4294966784  ;;  %s493_s27 = sand.u32 1, %s2753_s18  }
 0x109   : > { %s494_s17 = scalar_lea.sflag [#allocation9], %s493_s27 }
 0x10d   : > { %s2485_s12 = sand.u32 1, %s2758_s16   ;;  %p2760_p3 = scmp.ne.s32.totalorder %s2759_s21, 0 }
 0x10e   : > { %s1408_s19 = sshll.u32 %s2485_s12, 5 }
 0x10f   : > { %s2488_s5 = scalar_lea.vmem [#allocation8], %s1408_s19 }
 0x110   : > { %2019 = dma.done.wait (%p2760_p3), %s494_s17, 1024  }
 0x111   : > { %2021 = vsyncadd (%p2760_p3), %s494_s17, 4294966272  ;;  %s2494_s14 = scalar_lea.vmem [#allocation10], %s1408_s19  ;;  %s512_s1 = scalar_lea.sflag [#allocation12], %s493_s27 }
 0x112   : > { %s2496_s0 = scalar_lea.vmem [#allocation11], %s1408_s19 }
 0x113   : > { %2023 = dma.done.wait (%p2760_p3), %s512_s1, 768  }
 0x114   : > { %2025 = vsyncadd (%p2760_p3), %s512_s1, 4294966528  ;;  %s1411_s24 = sshll.u32 %s2485_s12, 4  ;;  %p2761_p6 = pmov %p2757_p1 }
 0x115   : > { %s2503_s29 = scalar_lea.vmem [#allocation13], %s1411_s24 }
 0x116   : > { %2027 = dma.done.wait (%p2761_p6), [#allocation15], 16   ;;  %p2762_p8 = pmov %p2757_p1 }
 0x117   : > { %s2509_s15 = scalar_lea.vmem [#allocation17], %s1411_s24  ;;  %s2763_s28 = sld [smem:[#allocation28_spill]] }
 0x118   : > { %2029 = vsyncadd (%p2762_p8), [#allocation15], 4294967280 }
 0x11d   : > { %p1414_p13 = scmp.ne.s32.totalorder %s2763_s28, 0 }
 0x11e   : > { %vm588_vm0 = vcmask (!%p1414_p13), 523264   ;;  %v2074_v0 = vmov (!%p1414_p13), 0.0  }
 0x11f   : > { %587 = sbr.rel (%p1414_p13) target bundleno = 294 (0x126), region = 88  ;;  %589 = vst.msk [vmem:[#allocation16] sm:$0xff] (!%p1414_p13), %vm588_vm0, %v2074_v0  ;;  %590 = vst.msk [vmem:[#allocation16 + $0x8] sm:$0xff] (!%p1414_p13), %vm588_vm0, %v2074_v0 }
 0x126 PF: > { %v1678_v1 = vld [vmem:[%s2494_s14] sm:$0xff]   ;;  %v2075_v2 = vmov 0.0   ;;  %v1679_v3 = vld [vmem:[%s2494_s14 + $0x8] sm:$0xff]   ;;  %vm2076_vm1 = vmmov 0   ;;  %v1681_v6 = vld [vmem:[%s2494_s14 + $0x10] sm:$0xff]   ;;  %vm632_vm2 = vcmask 523264  }
 0x127   : > { %1487 = vmatprep.subr.bf16.mxu1 %v2075_v2  ;;  %1475 = vmatprep.subr.bf16.mxu0 %v2075_v2  ;;  %v1680_v4 = vld [vmem:[%s2488_s5] sm:$0xff]   ;;  %v1682_v5 = vld [vmem:[%s2488_s5 + $0x8] sm:$0xff]   ;;  %v1683_v7 = vld [vmem:[%s2494_s14 + $0x18] sm:$0xff]   ;;  %vm835_vm3 = vcmask 261120   ;;  %vm928_vm4 = vcmask 64512   ;;  %vm960_vm5 = vcmask 1043456  }
 0x128   : > { %1488 = vmatpush3.bf16.msra.mxu1 %v1678_v1  ;;  %1495 = vmatprep.mubr.msk.bf16.mxu1 %vm2076_vm1, %v2075_v2  ;;  %v1684_v8 = vld [vmem:[%s2488_s5 + $0x10] sm:$0xff]   ;;  %v594_v9 = vld [vmem:[#allocation5] sm:$0xff]  ;;  %v595_v10 = vld [vmem:[#allocation5 + $0x8] sm:$0xff]  ;;  %s2764_s22 = sld [smem:[#allocation28_spill]] }
 0x129   : > { %1489 = vmatprep.subr.bf16.mxu1 %v2075_v2  ;;  %1483 = vmatprep.mubr.msk.bf16.mxu0 %vm2076_vm1, %v2075_v2  ;;  %v1685_v11 = vld [vmem:[%s2488_s5 + $0x18] sm:$0xff]   ;;  %v591_v12 = vld [vmem:[#allocation2] sm:$0xff]  ;;  %v596_v14 = vpack.c.bf16 %v595_v10, %v594_v9  ;;  %v1686_v30 = vld [vmem:[%s2496_s0] sm:$0xff]  }
 0x12a   : > { %1476 = vmatpush3.bf16.msra.mxu0 %v1680_v4  ;;  %v592_v13 = vld [vmem:[#allocation2 + $0x8] sm:$0xff]  ;;  %v1687_v31 = vld [vmem:[%s2496_s0 + $0x8] sm:$0xff]   ;;  %v1688_v32 = vld [vmem:[%s2496_s0 + $0x10] sm:$0xff]  }
 0x12b   : > { %1477 = vmatprep.subr.bf16.mxu0 %v2075_v2  ;;  %v593_v15 = vpack.c.bf16 %v592_v13, %v591_v12  ;;  %v1689_v33 = vld [vmem:[%s2496_s0 + $0x18] sm:$0xff]   ;;  %v597_v34 = vld [vmem:[#allocation7] sm:$0xff] }
 0x12c   : > { %1490 = vmatpush3.bf16.msra.mxu1 %v1679_v3  ;;  %v598_v35 = vld [vmem:[#allocation7 + $0x8] sm:$0xff]  ;;  %v1690_v10 = vld [vmem:[%s2503_s29] sm:$0xff]  }
 0x12d   : > { %1491 = vmatprep.subr.bf16.mxu1 %v2075_v2  ;;  %v599_v36 = vpack.c.bf16 %v598_v35, %v597_v34 }
 0x12e   : > { %1478 = vmatpush3.bf16.msra.mxu0 %v1682_v5  ;;  %p1437_p11 = scmp.ne.s32.totalorder %s2764_s22, 3 }
 0x12f   : > { %1479 = vmatprep.subr.bf16.mxu0 %v2075_v2 }
 0x130   : > { %1492 = vmatpush3.bf16.msra.mxu1 %v1681_v6 }
 0x131   : > { %1493 = vmatprep.subr.bf16.mxu1 %v2075_v2 }
 0x132   : > { %1480 = vmatpush3.bf16.msra.mxu0 %v1684_v8 }
 0x133   : > { %1481 = vmatprep.subr.bf16.mxu0 %v2075_v2 }
 0x134   : > { %1494 = vmatpush3.bf16.msra.mxu1 %v1683_v7 }
 0x135   : > { %1511 = vmatprep.subr.bf16.mxu1 %v2075_v2 }
 0x136   : > { %1482 = vmatpush3.bf16.msra.mxu0 %v1685_v11  ;;  %v1691_v11 = vld [vmem:[%s2503_s29 + $0x8] sm:$0xff]  }
 0x137   : > { %1496 = vmatmul.mubr.msk.bf16.vlgmr.msra.gmra.mrb[0].mxu1 %vm632_vm2, %v596_v14  ;;  %1499 = vmatprep.subr.bf16.mxu0 %v2075_v2 }
 0x138   : > { %1513 = vmatprep.mubr.msk.bf16.mxu1 %vm2076_vm1, %v2075_v2 }
 0x139   : > { %1484 = vmatmul.mubr.msk.bf16.vlgmr.msra.gmra.mrb[0].mxu0 %vm632_vm2, %v593_v15 }
 0x13a   : > { %1507 = vmatprep.mubr.msk.bf16.mxu0 %vm2076_vm1, %v2075_v2  ;;  %1500 = vmatpush3.bf16.msra.mxu0 %v1686_v30 }
 0x13b   : > { %1501 = vmatprep.subr.bf16.mxu0 %v2075_v2 }
 0x13e   : > { %1502 = vmatpush3.bf16.msra.mxu0 %v1687_v31 }
 0x13f   : > { %1503 = vmatprep.subr.bf16.mxu0 %v2075_v2 }
 0x142   : > { %1504 = vmatpush3.bf16.msra.mxu0 %v1688_v32 }
 0x143   : > { %1505 = vmatprep.subr.bf16.mxu0 %v2075_v2 }
 0x146   : > { %1506 = vmatpush3.bf16.msra.mxu0 %v1689_v33 }
 0x147   : > { %1523 = vmatprep.subr.bf16.mxu0 %v2075_v2 }
 0x149   : > { %1508 = vmatmul.mubr.msk.bf16.vlgmr.msra.gmra.mrb[4].mxu0 %vm632_vm2, %v599_v36 }
 0x14a   : > { %1525 = vmatprep.mubr.msk.bf16.mxu0 %vm2076_vm1, %v2075_v2 }
 0x20a   : > { %v746_v16 = vpop.f32.mrb[0].mxu1 }
 0x20b   : > { %v831_v17 = vpack.c.bf16 %v746_v16, %v746_v16  ;;  %v1497_v18 = vpop.f32.mrb[1].mxu1 }
 0x20c   : > { %v749_v19 = vpop.f32.mrb[2].mxu1  ;;  %v670_v20 = vpop.f32.mrb[0].mxu0 }
 0x20d   : > { %v840_v21 = vsel %vm835_vm3, %v831_v17, 0  ;;  %v1498_v22 = vpop.f32.mrb[3].mxu1  ;;  %v1485_v23 = vpop.f32.mrb[1].mxu0  ;;  %v832_v26 = vpack.c.bf16 %v749_v19, %v749_v19  ;;  %v829_v27 = vpack.c.bf16 %v670_v20, %v670_v20 }
 0x20e   : > { %1512 = vmatpush3.bf16.xpose.msra.mxu1 %v840_v21  ;;  %v673_v24 = vpop.f32.mrb[2].mxu0  ;;  %v1111_v21 = vld [vmem:[#allocation16] sm:$0xff]  ;;  %v1112_v23 = vld [vmem:[#allocation16 + $0x8] sm:$0xff] }
 0x20f   : > { %v1486_v25 = vpop.f32.mrb[3].mxu0  ;;  %1517 = vmatprep.subr.bf16.mxu1 %v2075_v2  ;;  %v886_v28 = vsel %vm835_vm3, %v832_v26, 0  ;;  %v830_v29 = vpack.c.bf16 %v673_v24, %v673_v24 }
 0x215   : > { %1514 = vmatmul.mubr.msk.bf16.vlgmr.msra.gmra.mrb[4].mxu1 %vm835_vm3, %v829_v27 }
 0x216   : > { %1518 = vmatpush3.bf16.xpose.msra.mxu1 %v886_v28  ;;  %1519 = vmatprep.mubr.msk.bf16.mxu1 %vm2076_vm1, %v2075_v2 }
 0x217   : > { %1529 = vmatprep.subr.bf16.mxu1 %v2075_v2 }
 0x21c   : > { %v822_v57 = vpop.f32.mrb[4].mxu0 }
 0x21d   : > { %1520 = vmatmul.mubr.msk.bf16.vlgmr.msra.gmra.mrb[8].mxu1 %vm835_vm3, %v830_v29  ;;  %v833_v58 = vpack.c.bf16 %v822_v57, %v822_v57  ;;  %v1509_v59 = vpop.f32.mrb[5].mxu0  ;;  %v1438_v29 = vld [vmem:[#allocation14] ss:$0 sm:$0xff] (!%p1437_p11) }
 0x21e   : > { %1531 = vmatprep.mubr.msk.bf16.mxu1 %vm2076_vm1, %v2075_v2  ;;  %v825_v61 = vpop.f32.mrb[6].mxu0 }
 0x21f   : > { %v962_v60 = vsel %vm960_vm5, %v833_v58, 0  ;;  %v1510_v62 = vpop.f32.mrb[7].mxu0  ;;  %v834_v63 = vpack.c.bf16 %v825_v61, %v825_v61 }
 0x220   : > { %1524 = vmatpush3.bf16.msra.mxu0 %v962_v60 }
 0x221   : > { %1535 = vmatprep.subr.bf16.mxu0 %v2075_v2  ;;  %v1008_v0 = vsel %vm960_vm5, %v834_v63, 0 }
 0x222   : > { %1530 = vmatpush3.bf16.msra.mxu1 %v1008_v0 }
 0x2e8   : > { %v876_v37 = vpop.f32.mrb[4].mxu1 }
 0x2e9   : > { %v1515_v38 = vpop.f32.mrb[5].mxu1  ;;  %v929_v39 = vsel %vm928_vm4, %v876_v37, -inf }
 0x2ea   : > { %930 = vmax.xlane.f32.xlu0 %v929_v39  ;;  %v879_v40 = vpop.f32.mrb[6].mxu1 }
 0x2eb   : > { %v1516_v41 = vpop.f32.mrb[7].mxu1 }
 0x2f0   : > { %v922_v42 = vpop.f32.mrb[8].mxu1 }
 0x2f1   : > { %v1521_v43 = vpop.f32.mrb[9].mxu1  ;;  %v932_v44 = vsel %vm928_vm4, %v922_v42, -inf }
 0x2f2   : > { %933 = vmax.xlane.f32.xlu0 %v932_v44  ;;  %v925_v45 = vpop.f32.mrb[10].mxu1 }
 0x2f3   : > { %v1522_v46 = vpop.f32.mrb[11].mxu1 }
 0x377   : > { %v931_v47 = vpop.xlane.xlu0 %930 }
 0x378   : > { %v935_v48 = vsub.f32 %v876_v37, %v931_v47 }
 0x37a   : > { %v937_v49 = vmul.f32 1.442695, %v935_v48 }
 0x37c   : > { %1692 = vpow2.f32 %v937_v49 }
 0x37f   : > { %v934_v50 = vpop.xlane.xlu0 %933 }
 0x380   : > { %v936_v51 = vsub.f32 %v922_v42, %v934_v50 }
 0x382   : > { %v939_v52 = vmul.f32 1.442695, %v936_v51 }
 0x384   : > { %1694 = vpow2.f32 %v939_v52 }
 0x386   : > { %v1693_v53 = vpop.eup %1692 }
 0x387   : > { %v941_v54 = vsel %vm928_vm4, %v1693_v53, 0.0 }
 0x388   : > { %942 = vadd.xlane.f32.xlu1 %v941_v54 }
 0x38e   : > { %v1695_v55 = vpop.eup %1694 }
 0x38f   : > { %v944_v56 = vsel %vm928_vm4, %v1695_v55, 0.0 }
 0x390   : > { %945 = vadd.xlane.f32.xlu1 %v944_v56 }
 0x415   : > { %v943_v1 = vpop.xlane.xlu1 %942 }
 0x416   : > { %1696 = vrcp.f32 %v943_v1 }
 0x41d   : > { %v946_v3 = vpop.xlane.xlu1 %945 }
 0x41e   : > { %1698 = vrcp.f32 %v946_v3 }
 0x420   : > { %v1697_v4 = vpop.eup %1696 }
 0x421   : > { %v951_v5 = vmul.f32 %v1697_v4, %v1693_v53 }
 0x423   : > { %953 = vst.msk [vmem:[%s2509_s15] sm:$0xff] %vm928_vm4, %v951_v5  ;;  %v955_v6 = vpack.c.bf16 %v951_v5, %v951_v5 }
 0x425   : > { %1526 = vmatmul.mubr.msk.bf16.vlgmr.msra.gmra.mrb[8].mxu0 %vm928_vm4, %v955_v6 }
 0x426   : > { %1539 = vmatprep.mubr.msk.bf16.mxu0 %vm2076_vm1, %v2075_v2  ;;  %1536 = vmatpush3.bf16.msra.mxu0 %v1690_v10 }
 0x427   : > { %1537 = vmatprep.subr.bf16.mxu0 %v2075_v2 }
 0x428   : > { %v1699_v7 = vpop.eup %1698 }
 0x429   : > { %v952_v8 = vmul.f32 %v1699_v7, %v1695_v55 }
 0x42a   : > { %1538 = vmatpush3.bf16.msra.mxu0 %v1691_v11 }
 0x42b   : > { %954 = vst.msk [vmem:[%s2509_s15 + $0x8] sm:$0xff] %vm928_vm4, %v952_v8  ;;  %v956_v9 = vpack.c.bf16 %v952_v8, %v952_v8 }
 0x42d   : > { %1532 = vmatmul.mubr.msk.bf16.vlgmr.msra.gmra.mrb[12].mxu1 %vm928_vm4, %v956_v9 }
 0x4f8   : > { %v998_v12 = vpop.f32.mrb[8].mxu0 }
 0x4f9   : > { %v1527_v13 = vpop.f32.mrb[9].mxu0 }
 0x4fa   : > { %v1001_v14 = vpop.f32.mrb[10].mxu0 }
 0x4fb   : > { %v1528_v15 = vpop.f32.mrb[11].mxu0 }
 0x500   : > { %v1044_v16 = vpop.f32.mrb[12].mxu1 }
 0x501   : > { %v1050_v17 = vpack.c.bf16 %v1044_v16, %v998_v12  ;;  %v1533_v18 = vpop.f32.mrb[13].mxu1 }
 0x502   : > { %v1047_v19 = vpop.f32.mrb[14].mxu1 }
 0x503   : > { %v1534_v20 = vpop.f32.mrb[15].mxu1  ;;  %1540 = vmatmul.mubr.msk.bf16.vlgmr.msra.gmra.mrb[12].mxu0 %vm835_vm3, %v1050_v17 }
 0x5d5   : > { %1120 = sbr.rel (%p1437_p11) target bundleno = 1510 (0x5e6), region = 92 }
 0x5d6   : > { %v1104_v22 = vpop.f32.mrb[12].mxu0 }
 0x5d7   : > { %v1113_v24 = vadd.f32 %v1111_v21, %v1104_v22  ;;  %v1541_v25 = vpop.f32.mrb[13].mxu0 }
 0x5d8   : > { %v1107_v26 = vpop.f32.mrb[14].mxu0 }
 0x5d9   : > { %1115 = vst.msk [vmem:[#allocation16] sm:$0xff] %vm632_vm2, %v1113_v24  ;;  %v1114_v2 = vadd.f32 %v1112_v23, %v1107_v26  ;;  %v1542_v27 = vpop.f32.mrb[15].mxu0 }
 0x5db   : > { %1116 = vst.msk [vmem:[#allocation16 + $0x8] sm:$0xff] %vm632_vm2, %v1114_v2 }
 0x5e0   : > { %v1121_v28 = vld [vmem:[#allocation16] sm:$0xff] }
 0x5e1   : > { %v1130_v31 = vadd.f32 %v1438_v29, %v1121_v28 }
 0x5e2   : > { %v1122_v30 = vld [vmem:[#allocation16 + $0x8] sm:$0xff] }
 0x5e3   : > { %v1131_v32 = vadd.f32 %v1438_v29, %v1122_v30  ;;  %1132 = vst.msk [vmem:[#allocation16] sm:$0xff] %vm632_vm2, %v1130_v31 }
 0x5e5   : > { %1133 = vst.msk [vmem:[#allocation16 + $0x8] sm:$0xff] %vm632_vm2, %v1131_v32 }
 0x5e6 PF: > { %s2077_s23 = smov [#allocation16]   ;;  %s2765_s3 = sld [smem:[#allocation30_spill]] }
 0x5e7   : > { %s1149_s30 = sshll.u32 %s2077_s23, 4  ;;  %s1150_s30 = int_to_ptr.vmem [resolvable:$true] %s1149_s30 }
 0x5e8   : > { %s1932_s8 = scalar_lea.vmem %s1150_s30, 256  ;;  %p1939_p7 = scmp.lt.s32.totalorder %s1150_s30, %s1150_s30 }
 0x5e9   : > { %p1933_p0 = scmp.ne.s32.totalorder %s1150_s30, %s1932_s8  ;;  %p1940_p9 = scmp.lt.s32.totalorder %s1932_s8, %s1932_s8 }
 0x5eb   : > { %p1941_p10 = por %p1940_p9, %p1939_p7 }
 0x5ec   : > { %p2766_p5 = scmp.eq.s32.totalorder %s2765_s3, 3 }
 0x5ee   : > { %p1934_p2 = pnand %p1933_p0, %p2766_p5 }
 0x5f0   : > { %p1935_p4 = pneg %p1934_p2 }
 0x5f2   : > { %p1942_p12 = pnand %p1941_p10, %p1935_p4 }
 0x5f4   : > { %1945 = shalt.err (!%p1942_p12)
}
 0x5f5   : > { %s2767_s20 = sld [smem:[#allocation40_spill]]  ;;  %p2768_p3 = pmov %p2766_p5 }
 0x5fb   : > { %s1946_s10 = scalar_lea.hbm %s2767_s20, 256 }
 0x5fc   : > { %p1947_p1 = scmp.ne.s32.totalorder %s2767_s20, %s1946_s10  ;;  %p1952_p13 = scmp.lt.u32.totalorder %s1946_s10, %s2767_s20 }
 0x5fe   : > { %p1948_p6 = pnand %p1947_p1, %p2768_p3 }
 0x600   : > { %p1949_p8 = pneg %p1948_p6 }
 0x602   : > { %p1954_p11 = pnand %p1952_p13, %p1949_p8 }
 0x604   : > { %1957 = shalt.err (!%p1954_p11)
}
 0x605   : > { %s2078_s27 = smov 128   ;;  %s2769_s19 = sld [smem:[#allocation28_spill]] }
 0x606   : > { %s2770_s17 = sld [smem:[#allocation34_spill]]  ;;  %s2079_s5 = smov 8  }
 0x607   : > { %p2771_p0 = pmov %p2768_p3  ;;  %s2772_s28 = sld [smem:[#allocation41_spill]] }
 0x608   : > { %s1168_s23 = sshll.u32 %s2509_s15, 4  ;;  %s1135_s8 = scalar_lea.sflag [#allocation18], %s2485_s12  ;;  %s2611_s23 = int_to_ptr.vmem [resolvable:$true] %s1168_s23 }
 0x609   : > { %1568 = dma.vmem_to_hbm [thread:$0]  (%p2771_p0), %s1150_s30, 256, %s2767_s20, [#allocation4], %s2078_s27, %s2078_s27, %s2079_s5  }
 0x60a   : > { %s1958_s9 = scalar_lea.vmem %s2611_s23, 256  ;;  %s2080_s25 = smov [#allocation17]  }
 0x60b   : > { %s1441_s0 = sshll.u32 %s2769_s19, 7  ;;  %p1959_p5 = scmp.ne.s32.totalorder %s2611_s23, %s1958_s9 }
 0x60c   : > { %p2773_p2 = scmp.ne.s32.totalorder %s2770_s17, 0  ;;  %s1962_s30 = sshll.u32 %s2080_s25, 4  ;;  %s1963_s30 = int_to_ptr.vmem [resolvable:$false] %s1962_s30 }
 0x60d   : > { %s2608_s22 = scalar_lea.hbm %s2772_s28, %s1441_s0  ;;  %s1964_s10 = scalar_lea.vmem %s1963_s30, 512 }
 0x60e   : > { %p1960_p4 = pnand %p1959_p5, %p2773_p2  ;;  %p1965_p9 = scmp.lt.s32.totalorder %s2611_s23, %s1963_s30 }
 0x60f   : > { %p1966_p10 = scmp.lt.s32.totalorder %s1964_s10, %s1958_s9 }
 0x610   : > { %p1961_p7 = pneg %p1960_p4 }
 0x611   : > { %p1967_p12 = por %p1966_p10, %p1965_p9 }
 0x613   : > { %p1968_p1 = pnand %p1967_p12, %p1961_p7 }
 0x615   : > { %1971 = shalt.err (!%p1968_p1)
}
 0x616   : > { %s1972_s15 = scalar_lea.hbm %s2608_s22, 256  ;;  %s1976_s16 = scalar_lea.hbm %s2772_s28, 1024 }
 0x617   : > { %p1973_p3 = scmp.ne.s32.totalorder %s2608_s22, %s1972_s15  ;;  %p1977_p13 = scmp.lt.u32.totalorder %s2608_s22, %s2772_s28 }
 0x618   : > { %p1978_p11 = scmp.lt.u32.totalorder %s1976_s16, %s1972_s15  ;;  %p1980_p5 = scmp.lt.u32.totalorder %s1972_s15, %s2608_s22 }
 0x619   : > { %p1974_p6 = pnand %p1973_p3, %p2773_p2 }
 0x61a   : > { %p1979_p0 = por %p1978_p11, %p1977_p13 }
 0x61b   : > { %p1975_p8 = pneg %p1974_p6 }
 0x61c   : > { %p1981_p4 = por %p1980_p5, %p1979_p0 }
 0x61e   : > { %p1982_p7 = pnand %p1981_p4, %p1975_p8 }
 0x620   : > { %1985 = shalt.err (!%p1982_p7)
}
 0x621   : > { %s2081_s14 = smov 512   ;;  %p2774_p9 = scmp.eq.s32.totalorder %s2765_s3, 3 }
 0x622   : > { %1569 = dma.vmem_to_hbm [thread:$0]  (%p2773_p2), %s2611_s23, 256, %s2608_s22, %s1135_s8, %s2078_s27, %s2081_s14, %s2079_s5  }
 0x623   : > { %2031 = dma.done.wait (%p2774_p9), [#allocation4], 256   ;;  %p2775_p10 = pmov %p2774_p9 }
 0x625   : > { %2033 = vsyncadd (%p2775_p10), [#allocation4], 4294967040 }
 0x626 PF: > { %s2776_s1 = sld [smem:[#allocation29_spill]]  ;;  %s2777_s0 = sld [smem:[#allocation26_spill]] }
 0x627   : > { %s2778_s24 = sld [smem:[#allocation32_spill]] }
 0x62c   : > { %p1614_p12 = scmp.ge.s32.totalorder %s2776_s1, 2  ;;  %s1187_s29 = sand.u32 1, %s2777_s0  }
 0x62d   : > { %p2779_p1 = scmp.ne.s32.totalorder %s2778_s24, 0  ;;  %s1188_s17 = scalar_lea.sflag [#allocation18], %s1187_s29 }
 0x62f   : > { %p1600_p3 = pnand %p1614_p12, %p2779_p1 }
 0x631   : > { %2035 = dma.done.wait (!%p1600_p3), %s1188_s17, 256  }
 0x632   : > { %2037 = vsyncadd (!%p1600_p3), %s1188_s17, 4294967040  ;;  %s33_s14 = sadd.s32 1, %s2776_s1   ;;  %s2780_s30 = sld [smem:[#allocation27_spill]] }
 0x633   : > { %p30_p6 = scmp.ge.s32.totalorder %s33_s14, 6   ;;  %s2781_s12 = sld [smem:[#allocation35_spill]] }
 0x634   : > { %s2782_s3 = sld [smem:[#allocation33_spill]]  ;;  %s2783_s10 = smov %s2048_s11 }
 0x635   :  { %32 = sbr.rel (!%p30_p6) target bundleno = 19 (0x13), region = 170 }
 0x639   : > { %s2784_s11 = smov %s2781_s12  ;;  %s2785_s12 = smov %s2056_s13 }
 0x63a   : > { %s2786_s13 = smov %s2782_s3 }
 0x63c   :  { %1193 = vsyncpa [#allocation3], 1 }
 0x63d   :  { %1195 = vsyncpa [#allocation3 + $0x1], 1 }
 0x63e   :  { %1196 = vsyncpa [#allocation6], 1 }
 0x63f   :  { %1197 = vsyncpa [#allocation9], 1 }
 0x640   :  { %1199 = vsyncpa [#allocation9 + $0x1], 1 }
 0x641   :  { %1200 = vsyncpa [#allocation12], 1 }
 0x642   :  { %1202 = vsyncpa [#allocation12 + $0x1], 1 }
 0x643   :  { %1203 = vsyncpa [#allocation15], 1 }
 0x644   :  { %1204 = vsyncpa [#allocation4], 1 }
 0x645   :  { %1206 = vsyncpa [#allocation4 + $0x1], 1 }
 0x646   :  { %1207 = vsyncpa [#allocation18], 1 }
 0x647   :  { %1209 = vsyncpa [#allocation18 + $0x1], 1 }

</bundles_post_ra>
